<compile_context>
chip_gen: v5e
topology: v5e:2x2
jax: 0.10.0
libtpu: 0.0.40
codegen_flags: <defaults>
</compile_context>

<pallas_src>
import jax
import jax.numpy as jnp
from jax.experimental import pallas as pl
from jax.experimental.pallas import tpu as pltpu


def _visual_warpper_kernel(x_ref, w1t_ref, b1_ref, w2t_ref, b2_ref,
                           o_ref, acc_ref):
    # x_ref:   (N, C, HT)    channels-first activation tile (HW on lanes)
    # w1t_ref: (COUT, C)     1x1-conv weight, pre-transposed
    # b1_ref:  (COUT, 1)
    # w2t_ref: (OUT, COUT)   value-head weight, pre-transposed, scaled by -1/HW
    # b2_ref:  (OUT, 1)      == -b2
    # o_ref:   (OUT, N)      -value head (transposed; wrapper transposes back)
    # acc_ref: (N, COUT, 1)  running spatial sum of relu(conv1x1(x))
    k = pl.program_id(0)
    nb = x_ref.shape[0]

    @pl.when(k == 0)
    def _init():
        acc_ref[...] = jnp.zeros_like(acc_ref)

    w1t = w1t_ref[...]                       # (COUT, C)
    b1 = b1_ref[...]                         # (COUT, 1)
    for b in range(nb):                      # static unroll over (small) batch
        xb = x_ref[b]                        # (C, HT), HW lane-dense
        h = jnp.dot(w1t, xb, preferred_element_type=jnp.float32) + b1
        h = jnp.maximum(h, 0.0)              # (COUT, HT) "features" tile
        # partial spatial sum for this HW tile
        acc_ref[b] = acc_ref[b] + jnp.sum(h, axis=1, keepdims=True)

    @pl.when(k == pl.num_programs(0) - 1)
    def _epilogue():
        w2t = w2t_ref[...]                   # already folds (-1/HW) and negate
        b2 = b2_ref[...]                     # already folds negate
        for b in range(nb):
            val = jnp.dot(w2t, acc_ref[b],
                          preferred_element_type=jnp.float32) + b2   # (OUT, 1)
            o_ref[:, b:b + 1] = val


def _pick_hw_tile(hw, n, c, bytes_budget=4 << 20):
    """Largest HW tile (multiple of 128, dividing hw) whose (n, c, ht) f32
    block stays under bytes_budget; full-extent block if hw isn't 128-aligned."""
    if hw % 128 != 0:
        return hw
    max_ht = max(128, (bytes_budget // (n * c * 4)) // 128 * 128)
    ht = min(max_ht, hw)
    while hw % ht != 0:
        ht -= 128
    return ht


def visual_warpper_forward(x_nchw, w1, b1, w2, b2, *, ht=None):
    """x_nchw: (N, C, H, W) float32.  Returns (N, OUT) float32 == -value_head."""
    N, C, H, W = x_nchw.shape
    Cout = w1.shape[1]
    OUT = w2.shape[1]
    HW = H * W

    # Free layout change: NCHW -> (N, C, HW).  No transpose, no extra HBM pass.
    x = x_nchw.reshape(N, C, HW)

    if ht is None:
        ht = _pick_hw_tile(HW, N, C)
    assert HW % ht == 0, (HW, ht)
    num_k = HW // ht

    # Tiny host-side weight prep: transpose for channels-first matmuls, fold
    # the 1/HW mean scale and the wrapper's negation into the value head.
    w1t = jnp.asarray(w1, jnp.float32).T                       # (Cout, C)
    b1c = jnp.asarray(b1, jnp.float32).reshape(Cout, 1)        # (Cout, 1)
    w2t = (jnp.asarray(w2, jnp.float32) * (-1.0 / HW)).T       # (OUT, Cout)
    b2c = -jnp.asarray(b2, jnp.float32).reshape(OUT, 1)        # (OUT, 1)

    out_t = pl.pallas_call(
        _visual_warpper_kernel,
        out_shape=jax.ShapeDtypeStruct((OUT, N), jnp.float32),
        grid_spec=pltpu.PrefetchScalarGridSpec(
            num_scalar_prefetch=0,
            grid=(num_k,),                                     # HW reduction axis
            in_specs=[
                pl.BlockSpec((N, C, ht), lambda k: (0, 0, k)),
                pl.BlockSpec((Cout, C), lambda k: (0, 0)),
                pl.BlockSpec((Cout, 1), lambda k: (0, 0)),
                pl.BlockSpec((OUT, Cout), lambda k: (0, 0)),
                pl.BlockSpec((OUT, 1), lambda k: (0, 0)),
            ],
            out_specs=pl.BlockSpec((OUT, N), lambda k: (0, 0)),
            scratch_shapes=[pltpu.VMEM((N, Cout, 1), jnp.float32)],
        ),
        compiler_params=pltpu.CompilerParams(
            dimension_semantics=("arbitrary",)),
    )(x, w1t, b1c, w2t, b2c)

    # (OUT, N) -> (N, OUT): 64-byte transpose, negligible XLA glue.
    return out_t.T


def _reference(x_nchw, w1, b1, w2, b2):
    """Pure-JAX reference of the same synthetic network + wrapper."""
    N, C, H, W = x_nchw.shape
    x = jnp.transpose(x_nchw, (0, 2, 3, 1)).reshape(N, H * W, C)
    h = jnp.maximum(jnp.einsum('nsc,cd->nsd', x, w1) + b1, 0.0)
    pooled = jnp.mean(h, axis=1)
    val = pooled @ w2 + b2
    return -val


if __name__ == "__main__":
    key = jax.random.PRNGKey(0)
    kx, kw1, kb1, kw2, kb2 = jax.random.split(key, 5)

    # Small shapes consistent with a visual input: batch=2, channels=4, 16x16
    N, C, H, W = 2, 4, 16, 16
    COUT, OUT = 32, 8

    x = jax.random.normal(kx, (N, C, H, W), dtype=jnp.float32)
    w1 = jax.random.normal(kw1, (C, COUT), dtype=jnp.float32) * 0.1
    b1 = jax.random.normal(kb1, (COUT,), dtype=jnp.float32) * 0.1
    w2 = jax.random.normal(kw2, (COUT, OUT), dtype=jnp.float32) * 0.1
    b2 = jax.random.normal(kb2, (OUT,), dtype=jnp.float32) * 0.1

    ref = _reference(x, w1, b1, w2, b2)

    # Tiled-HW path (2 reduction steps -> exercises the accumulator + pl.when).
    out = visual_warpper_forward(x, w1, b1, w2, b2, ht=128)
    out = jax.block_until_ready(out)
    assert out.shape == (N, OUT)
    assert jnp.allclose(out, ref, atol=1e-4, rtol=1e-4), "mismatch (ht=128)"

    # Auto tile (single full-extent HW block).
    out_full = visual_warpper_forward(x, w1, b1, w2, b2)
    out_full = jax.block_until_ready(out_full)
    assert jnp.allclose(out_full, ref, atol=1e-4, rtol=1e-4), "mismatch (auto ht)"

    print("KERNEL_OK")
</pallas_src>

<mosaic_0001>
module attributes {stable_mosaic.version = 11 : i64} {
  func.func @_visual_warpper_kernel(%arg0: i32, %arg1: memref<2x4x128xf32, #tpu.memory_space<vmem>>, %arg2: memref<32x4xf32, #tpu.memory_space<vmem>>, %arg3: memref<32x1xf32, #tpu.memory_space<vmem>>, %arg4: memref<8x32xf32, #tpu.memory_space<vmem>>, %arg5: memref<8x1xf32, #tpu.memory_space<vmem>>, %arg6: memref<8x2xf32, #tpu.memory_space<vmem>>, %arg7: memref<2x32x1xf32, #tpu.memory_space<vmem>>) attributes {dimension_semantics = [#tpu.dimension_semantics<arbitrary>], iteration_bounds = array<i64: 2>, scalar_prefetch = 0 : i64, scratch_operands = 1 : i64, tpu.core_type = #tpu.core_type<tc>, window_params = [{transform_indices = @transform_0, window_bounds = array<i64: 2, 4, 128>}, {pipeline_mode = #tpu.pipeline_mode<synchronous>, transform_indices = @transform_1, window_bounds = array<i64: 32, 4>}, {pipeline_mode = #tpu.pipeline_mode<synchronous>, transform_indices = @transform_2, window_bounds = array<i64: 32, 1>}, {pipeline_mode = #tpu.pipeline_mode<synchronous>, transform_indices = @transform_3, window_bounds = array<i64: 8, 32>}, {pipeline_mode = #tpu.pipeline_mode<synchronous>, transform_indices = @transform_4, window_bounds = array<i64: 8, 1>}, {pipeline_mode = #tpu.pipeline_mode<synchronous>, transform_indices = @transform_5, window_bounds = array<i64: 8, 2>}]} {
    %c0_i32 = arith.constant 0 : i32
    %0 = arith.cmpi eq, %arg0, %c0_i32 : i32
    %1 = arith.extui %0 : i1 to i32
    %c0_i32_0 = arith.constant 0 : i32
    %2 = arith.cmpi ne, %1, %c0_i32_0 : i32
    scf.if %2 {
      %cst_27 = arith.constant 0.000000e+00 : f32
      %38 = vector.broadcast %cst_27 : f32 to vector<2x32x1xf32>
      %c0_28 = arith.constant 0 : index
      %c0_29 = arith.constant 0 : index
      %c0_30 = arith.constant 0 : index
      %39 = vector.load %arg7[%c0_28, %c0_29, %c0_30] : memref<2x32x1xf32, #tpu.memory_space<vmem>>, vector<2x32x1xf32>
      tpu.vector_store %arg7[%c0_28, %c0_29, %c0_30], %38 {strides = array<i32>} : memref<2x32x1xf32, #tpu.memory_space<vmem>>, vector<2x32x1xf32>,
    } else {
    }
    %c0 = arith.constant 0 : index
    %c0_1 = arith.constant 0 : index
    %3 = vector.load %arg2[%c0, %c0_1] : memref<32x4xf32, #tpu.memory_space<vmem>>, vector<32x4xf32>
    %c0_2 = arith.constant 0 : index
    %c0_3 = arith.constant 0 : index
    %4 = vector.load %arg3[%c0_2, %c0_3] : memref<32x1xf32, #tpu.memory_space<vmem>>, vector<32x1xf32>
    %c0_4 = arith.constant 0 : index
    %c0_5 = arith.constant 0 : index
    %c0_6 = arith.constant 0 : index
    %5 = vector.load %arg1[%c0_4, %c0_5, %c0_6] : memref<2x4x128xf32, #tpu.memory_space<vmem>>, vector<1x4x128xf32>
    %6 = vector.shape_cast %5 : vector<1x4x128xf32> to vector<4x128xf32>
    %cst = arith.constant dense<0.000000e+00> : vector<32x128xf32>
    %7 = tpu.matmul %3, %6, %cst {dimension_numbers = #tpu.dot_dimension_numbers<[1], [0], [0], [1], [0, 0, 1, 1], [], []>} : vector<32x4xf32>, vector<4x128xf32>, vector<32x128xf32> -> vector<32x128xf32>
    %8 = vector.broadcast %4 : vector<32x1xf32> to vector<32x128xf32>
    %9 = arith.addf %7, %8 : vector<32x128xf32>
    %cst_7 = arith.constant 0.000000e+00 : f32
    %10 = vector.broadcast %cst_7 : f32 to vector<32x128xf32>
    %11 = arith.maximumf %9, %10 : vector<32x128xf32>
    %c0_8 = arith.constant 0 : index
    %c0_9 = arith.constant 0 : index
    %c0_10 = arith.constant 0 : index
    %12 = vector.load %arg7[%c0_8, %c0_9, %c0_10] : memref<2x32x1xf32, #tpu.memory_space<vmem>>, vector<1x32x1xf32>
    %13 = vector.shape_cast %12 : vector<1x32x1xf32> to vector<32x1xf32>
    %cst_11 = arith.constant dense<0.000000e+00> : vector<32xf32>
    %14 = vector.multi_reduction <add>, %11, %cst_11 [1] : vector<32x128xf32> to vector<32xf32>
    %15 = vector.shape_cast %14 : vector<32xf32> to vector<32x1xf32>
    %16 = arith.addf %13, %15 : vector<32x1xf32>
    %c0_12 = arith.constant 0 : index
    %c0_13 = arith.constant 0 : index
    %c0_14 = arith.constant 0 : index
    %17 = vector.load %arg7[%c0_12, %c0_13, %c0_14] : memref<2x32x1xf32, #tpu.memory_space<vmem>>, vector<1x32x1xf32>
    %18 = vector.shape_cast %17 : vector<1x32x1xf32> to vector<32x1xf32>
    %19 = vector.shape_cast %16 : vector<32x1xf32> to vector<1x32x1xf32>
    tpu.vector_store %arg7[%c0_12, %c0_13, %c0_14], %19 {strides = array<i32>} : memref<2x32x1xf32, #tpu.memory_space<vmem>>, vector<1x32x1xf32>,
    %c1 = arith.constant 1 : index
    %c0_15 = arith.constant 0 : index
    %c0_16 = arith.constant 0 : index
    %20 = vector.load %arg1[%c1, %c0_15, %c0_16] : memref<2x4x128xf32, #tpu.memory_space<vmem>>, vector<1x4x128xf32>
    %21 = vector.shape_cast %20 : vector<1x4x128xf32> to vector<4x128xf32>
    %cst_17 = arith.constant dense<0.000000e+00> : vector<32x128xf32>
    %22 = tpu.matmul %3, %21, %cst_17 {dimension_numbers = #tpu.dot_dimension_numbers<[1], [0], [0], [1], [0, 0, 1, 1], [], []>} : vector<32x4xf32>, vector<4x128xf32>, vector<32x128xf32> -> vector<32x128xf32>
    %23 = vector.broadcast %4 : vector<32x1xf32> to vector<32x128xf32>
    %24 = arith.addf %22, %23 : vector<32x128xf32>
    %cst_18 = arith.constant 0.000000e+00 : f32
    %25 = vector.broadcast %cst_18 : f32 to vector<32x128xf32>
    %26 = arith.maximumf %24, %25 : vector<32x128xf32>
    %c1_19 = arith.constant 1 : index
    %c0_20 = arith.constant 0 : index
    %c0_21 = arith.constant 0 : index
    %27 = vector.load %arg7[%c1_19, %c0_20, %c0_21] : memref<2x32x1xf32, #tpu.memory_space<vmem>>, vector<1x32x1xf32>
    %28 = vector.shape_cast %27 : vector<1x32x1xf32> to vector<32x1xf32>
    %cst_22 = arith.constant dense<0.000000e+00> : vector<32xf32>
    %29 = vector.multi_reduction <add>, %26, %cst_22 [1] : vector<32x128xf32> to vector<32xf32>
    %30 = vector.shape_cast %29 : vector<32xf32> to vector<32x1xf32>
    %31 = arith.addf %28, %30 : vector<32x1xf32>
    %c1_23 = arith.constant 1 : index
    %c0_24 = arith.constant 0 : index
    %c0_25 = arith.constant 0 : index
    %32 = vector.load %arg7[%c1_23, %c0_24, %c0_25] : memref<2x32x1xf32, #tpu.memory_space<vmem>>, vector<1x32x1xf32>
    %33 = vector.shape_cast %32 : vector<1x32x1xf32> to vector<32x1xf32>
    %34 = vector.shape_cast %31 : vector<32x1xf32> to vector<1x32x1xf32>
    tpu.vector_store %arg7[%c1_23, %c0_24, %c0_25], %34 {strides = array<i32>} : memref<2x32x1xf32, #tpu.memory_space<vmem>>, vector<1x32x1xf32>,
    %c1_i32 = arith.constant 1 : i32
    %35 = arith.cmpi eq, %arg0, %c1_i32 : i32
    %36 = arith.extui %35 : i1 to i32
    %c0_i32_26 = arith.constant 0 : i32
    %37 = arith.cmpi ne, %36, %c0_i32_26 : i32
    scf.if %37 {
      %c0_27 = arith.constant 0 : index
      %c0_28 = arith.constant 0 : index
      %38 = vector.load %arg4[%c0_27, %c0_28] : memref<8x32xf32, #tpu.memory_space<vmem>>, vector<8x32xf32>
      %c0_29 = arith.constant 0 : index
      %c0_30 = arith.constant 0 : index
      %39 = vector.load %arg5[%c0_29, %c0_30] : memref<8x1xf32, #tpu.memory_space<vmem>>, vector<8x1xf32>
      %c0_31 = arith.constant 0 : index
      %c0_32 = arith.constant 0 : index
      %c0_33 = arith.constant 0 : index
      %40 = vector.load %arg7[%c0_31, %c0_32, %c0_33] : memref<2x32x1xf32, #tpu.memory_space<vmem>>, vector<1x32x1xf32>
      %41 = vector.shape_cast %40 : vector<1x32x1xf32> to vector<32x1xf32>
      %cst_34 = arith.constant dense<0.000000e+00> : vector<8x1xf32>
      %42 = tpu.matmul %38, %41, %cst_34 {dimension_numbers = #tpu.dot_dimension_numbers<[1], [0], [0], [1], [0, 0, 1, 1], [], []>} : vector<8x32xf32>, vector<32x1xf32>, vector<8x1xf32> -> vector<8x1xf32>
      %43 = arith.addf %42, %39 : vector<8x1xf32>
      %c0_35 = arith.constant 0 : index
      %c0_36 = arith.constant 0 : index
      %44 = vector.load %arg6[%c0_35, %c0_36] : memref<8x2xf32, #tpu.memory_space<vmem>>, vector<8x1xf32>
      tpu.vector_store %arg6[%c0_35, %c0_36], %43 {strides = array<i32>} : memref<8x2xf32, #tpu.memory_space<vmem>>, vector<8x1xf32>,
      %c1_37 = arith.constant 1 : index
      %c0_38 = arith.constant 0 : index
      %c0_39 = arith.constant 0 : index
      %45 = vector.load %arg7[%c1_37, %c0_38, %c0_39] : memref<2x32x1xf32, #tpu.memory_space<vmem>>, vector<1x32x1xf32>
      %46 = vector.shape_cast %45 : vector<1x32x1xf32> to vector<32x1xf32>
      %cst_40 = arith.constant dense<0.000000e+00> : vector<8x1xf32>
      %47 = tpu.matmul %38, %46, %cst_40 {dimension_numbers = #tpu.dot_dimension_numbers<[1], [0], [0], [1], [0, 0, 1, 1], [], []>} : vector<8x32xf32>, vector<32x1xf32>, vector<8x1xf32> -> vector<8x1xf32>
      %48 = arith.addf %47, %39 : vector<8x1xf32>
      %c0_41 = arith.constant 0 : index
      %c1_42 = arith.constant 1 : index
      %49 = vector.load %arg6[%c0_41, %c1_42] : memref<8x2xf32, #tpu.memory_space<vmem>>, vector<8x1xf32>
      tpu.vector_store %arg6[%c0_41, %c1_42], %48 {strides = array<i32>} : memref<8x2xf32, #tpu.memory_space<vmem>>, vector<8x1xf32>,
    } else {
    }
    return
  }
  func.func @transform_0(%arg0: i32) -> (i32, i32, i32) {
    %c0_i32 = arith.constant 0 : i32
    %c0_i32_0 = arith.constant 0 : i32
    %c0_i32_1 = arith.constant 0 : i32
    return %c0_i32, %c0_i32_0, %arg0 : i32, i32, i32
  }
  func.func @transform_1(%arg0: i32) -> (i32, i32) {
    %c0_i32 = arith.constant 0 : i32
    %c0_i32_0 = arith.constant 0 : i32
    %c0_i32_1 = arith.constant 0 : i32
    return %c0_i32, %c0_i32_0 : i32, i32
  }
  func.func @transform_2(%arg0: i32) -> (i32, i32) {
    %c0_i32 = arith.constant 0 : i32
    %c0_i32_0 = arith.constant 0 : i32
    %c0_i32_1 = arith.constant 0 : i32
    return %c0_i32, %c0_i32_0 : i32, i32
  }
  func.func @transform_3(%arg0: i32) -> (i32, i32) {
    %c0_i32 = arith.constant 0 : i32
    %c0_i32_0 = arith.constant 0 : i32
    %c0_i32_1 = arith.constant 0 : i32
    return %c0_i32, %c0_i32_0 : i32, i32
  }
  func.func @transform_4(%arg0: i32) -> (i32, i32) {
    %c0_i32 = arith.constant 0 : i32
    %c0_i32_0 = arith.constant 0 : i32
    %c0_i32_1 = arith.constant 0 : i32
    return %c0_i32, %c0_i32_0 : i32, i32
  }
  func.func @transform_5(%arg0: i32) -> (i32, i32) {
    %c0_i32 = arith.constant 0 : i32
    %c0_i32_0 = arith.constant 0 : i32
    %c0_i32_1 = arith.constant 0 : i32
    return %c0_i32, %c0_i32_0 : i32, i32
  }
}

</mosaic_0001>

<bundles_post_ra>
// kernel: tpu_custom_call.1
= control target key start
LH: loop header
LB: loop body
LE: loop exit
PB: predicated region body
PF: predicated region fallthrough
CT: control target
= control target key end

     0   :  { %s640_s18 = smov 0   ;;  %s642_s19 = smov 0   ;;  %s744_s0 = inlined_call_operand.vmem [shape: f32[2,4,256], index: 0, kind: input, shape index: {}]   ;;  %s745_s1 = inlined_call_operand.vmem [shape: f32[32,4], index: 1, kind: input, shape index: {}]   ;;  %s746_s2 = inlined_call_operand.vmem [shape: f32[32,1], index: 2, kind: input, shape index: {}]   ;;  %s747_s3 = inlined_call_operand.vmem [shape: f32[8,32], index: 3, kind: input, shape index: {}]   ;;  %s748_s4 = inlined_call_operand.vmem [shape: f32[8,1], index: 4, kind: input, shape index: {}]   ;;  %s749_s5 = inlined_call_operand.vmem [shape: f32[8,2], index: 5, kind: output, shape index: {}]  }
   0x1   :  { %s644_s20 = smov 0  }
   0x2 LB: > { %s528_s21 = sadd.s32 4294967295, %s605_s20   ;;  %s657_s22 = sadd.s32 1, %s605_s20   ;;  %s605_s20 = sphi %s644_s20, %s752_s20   ;;  %s601_s19 = sphi %s642_s19, %s751_s19   ;;  %s597_s18 = sphi %s640_s18, %s750_s18  }
   0x3   : > { %s19_s23 = ssub.s32 %s605_s20, %s657_s22  ;;  %s22_s24 = sadd.s32 1, %s601_s19 }
   0x4   : > { %p20_p0 = scmp.eq.s32.totalorder %s19_s23, 0  ;;  %p29_p1 = scmp.ne.s32.totalorder %s601_s19, %s597_s18 }
   0x5   : > { %p30_p2 = scmp.eq.s32.totalorder %s605_s20, 0  ;;  %p530_p4 = scmp.ge.s32.totalorder %s605_s20, 2 }
   0x6   : > { %s666_s25 = scalar_select %p20_p0, %s601_s19, %s22_s24  }
   0x7   : > { %p31_p3 = por %p30_p2, %p29_p1  ;;  %172 = sbr.rel (%p530_p4) target bundleno = 18 (0x12), region = 32 }
   0xc   : > { %175 = sbr.rel (!%p31_p3) target bundleno = 18 (0x12), region = 36  ;;  %s177_s26 = sand.u32 (%p31_p3), 1, %s601_s19  }
   0xd   : > { %s532_s27 = sshll.u32 (%p31_p3), %s605_s20, 2  ;;  %s531_s28 = sshll.u32 (%p31_p3), %s177_s26, 3 }
   0xe   : > { %s181_s6 = scalar_lea.vmem (%p31_p3), %s744_s0, %s532_s27  ;;  %s179_s7 = scalar_lea.vmem (%p31_p3), [#allocation3], %s531_s28 }
   0xf   : > { %v198_v0 = vld [vmem:[%s181_s6] sm:$0xf] (%p31_p3)  ;;  %v200_v1 = vld [vmem:[%s181_s6 + $0x8] sm:$0xf] (%p31_p3) }
  0x10   : > { %199 = vst [vmem:[%s179_s7] sm:$0xf] (%p31_p3), %v198_v0 }
  0x11   : > { %201 = vst [vmem:[%s179_s7 + $0x4] sm:$0xf] %v200_v1 }
  0x12 PF: > { %p533_p5 = scmp.ge.s32.totalorder %s605_s20, 1  ;;  %p228_p6 = scmp.lt.s32.totalorder %s605_s20, 3 }
  0x14   : > { %p229_p7 = pnand %p533_p5, %p228_p6 }
  0x15   : > { %s235_s8 = sand.u32 (!%p229_p7), 1, %s597_s18   ;;  %p535_p8 = scmp.ne.s32.totalorder (!%p229_p7), %s528_s21, 0 }
  0x16   : > { %232 = sbr.rel (%p229_p7) target bundleno = 590 (0x24e), region = 77  ;;  %s534_s9 = sshll.u32 (!%p229_p7), %s235_s8, 3 }
  0x17   : > { %s237_s10 = scalar_lea.vmem (!%p229_p7), [#allocation3], %s534_s9 }
  0x1b   : > { %260 = sbr.rel (%p535_p8) target bundleno = 41 (0x29), region = 85 }
  0x20   : > { %vm261_vm0 = vcmask 7168   ;;  %v607_v2 = vmov 0.0  }
  0x21   : > { %262 = vst.msk [vmem:[#allocation2] sm:$0xff] %vm261_vm0, %v607_v2 }
  0x22   : > { %263 = vst.msk [vmem:[#allocation2 + $0x8] sm:$0xff] %vm261_vm0, %v607_v2 }
  0x23   : > { %264 = vst.msk [vmem:[#allocation2 + $0x10] sm:$0xff] %vm261_vm0, %v607_v2 }
  0x24   : > { %265 = vst.msk [vmem:[#allocation2 + $0x18] sm:$0xff] %vm261_vm0, %v607_v2 }
  0x25   : > { %266 = vst.msk [vmem:[#allocation2 + $0x20] sm:$0xff] %vm261_vm0, %v607_v2 }
  0x26   : > { %267 = vst.msk [vmem:[#allocation2 + $0x28] sm:$0xff] %vm261_vm0, %v607_v2 }
  0x27   : > { %268 = vst.msk [vmem:[#allocation2 + $0x30] sm:$0xff] %vm261_vm0, %v607_v2 }
  0x28   : > { %269 = vst.msk [vmem:[#allocation2 + $0x38] sm:$0xff] %vm261_vm0, %v607_v2 }
  0x29 PF: > { %v278_v3 = vld [vmem:[%s237_s10] sm:$0xf]  ;;  %vm312_vm1 = vcmask 1043456   ;;  %v541_v4 = vld [vmem:[%s237_s10 + $0x4] sm:$0xf]  ;;  %vm299_vm2 = vcmask 31744  }
  0x2a   : > { %v270_v5 = vld [vmem:[%s745_s1] sm:$0xff]  ;;  %536 = vmatpush.msk.msra.mxu0 %vm312_vm1, %v278_v3  ;;  %542 = vmatpush.msk.msra.mxu1 %vm312_vm1, %v541_v4  ;;  %v272_v7 = vld [vmem:[%s745_s1 + $0x10] sm:$0xff]  ;;  %v608_v8 = vmov 0   ;;  %v271_v10 = vld [vmem:[%s745_s1 + $0x8] sm:$0xff]  ;;  %vm365_vm3 = vcmask 7168   ;;  %p547_p9 = scmp.ne.s32.totalorder %s528_s21, 1 }
  0x2b   : > { %v274_v6 = vld [vmem:[%s746_s2] sm:$0xff]  ;;  %537 = vmatmul.msk.f32.vlgmr.msra.gmra.mxu0 %vm299_vm2, %v270_v5  ;;  %543 = vmatmul.msk.f32.vlgmr.msra.gmra.mxu1 %vm299_vm2, %v270_v5  ;;  %v276_v9 = vld [vmem:[%s746_s2 + $0x10] sm:$0xff]  ;;  %v275_v11 = vld [vmem:[%s746_s2 + $0x8] sm:$0xff]  ;;  %s609_s9 = smov (!%p547_p9), 1  }
  0x2c   : > { %581 = vset.pattern.permute.xlu0 %v608_v8  ;;  %552 = vmatpush.msk.msra.mxu2 %vm312_vm1, %v278_v3  ;;  %v273_v12 = vld [vmem:[%s745_s1 + $0x18] sm:$0xff]  ;;  %v349_v42 = vld [vmem:[#allocation2] sm:$0xff]  ;;  %v350_v45 = vld [vmem:[#allocation2 + $0x8] sm:$0xff] }
  0x2d   : > { %281 = vperm.xlu0 %581, %v274_v6   ;;  %553 = vmatpush.msk.msra.mxu3 %vm312_vm1, %v541_v4  ;;  %v277_v13 = vld [vmem:[%s746_s2 + $0x18] sm:$0xff]  ;;  %v351_v46 = vld [vmem:[#allocation2 + $0x10] sm:$0xff]  ;;  %v409_v51 = vld [vmem:[#allocation2 + $0x20] sm:$0xff] }
  0x2e   : > { %539 = vmatmul.msk.f32.vlgmr.msra.gmra.mxu2 %vm299_vm2, %v272_v7  ;;  %545 = vmatmul.msk.f32.vlgmr.msra.gmra.mxu3 %vm299_vm2, %v272_v7  ;;  %v352_v52 = vld [vmem:[#allocation2 + $0x18] sm:$0xff]  ;;  %v410_v57 = vld [vmem:[#allocation2 + $0x28] sm:$0xff]  ;;  %v411_v60 = vld [vmem:[#allocation2 + $0x30] sm:$0xff] }
  0x2f   : > { %582 = vset.pattern.permute.xlu1 %v608_v8  ;;  %v412_v63 = vld [vmem:[#allocation2 + $0x38] sm:$0xff] }
  0x30   : > { %291 = vperm.xlu1 %582, %v276_v9  }
  0x33   : > { %538 = vmatmul.msk.f32.gmra.mxu0 %vm299_vm2, %v271_v10  ;;  %544 = vmatmul.msk.f32.gmra.mxu1 %vm299_vm2, %v271_v10 }
  0x35   : > { %286 = vperm.xlu0 %581, %v275_v11  }
  0x36   : > { %540 = vmatmul.msk.f32.gmra.mxu2 %vm299_vm2, %v273_v12  ;;  %546 = vmatmul.msk.f32.gmra.mxu3 %vm299_vm2, %v273_v12 }
  0x38   : > { %296 = vperm.xlu1 %582, %v277_v13  }
  0x9f   : > { %v282_v14 = vpop.permute.xlu0 %281 }
  0xa2   : > { %v292_v18 = vpop.permute.xlu1 %291 }
  0xa7   : > { %v287_v19 = vpop.permute.xlu0 %286 }
  0xa8   : > { %v333_v15 = vpop.f32.mrf.mxu0  ;;  %v392_v23 = vpop.f32.mrf.mxu1 }
  0xa9   : > { %v334_v16 = vadd.f32 %v333_v15, %v282_v14  ;;  %v393_v27 = vadd.f32 %v392_v23, %v282_v14 }
  0xaa   : > { %v297_v28 = vpop.permute.xlu1 %296 }
  0xab   : > { %v345_v17 = vmax.f32 %v334_v16, 0.0  ;;  %v404_v31 = vmax.f32 %v393_v27, 0.0 }
  0xad   : > { %353 = vadd.xlane.f32.xlu2 %v345_v17 }
  0xb0   : > { %v336_v20 = vpop.f32.mrf.mxu0  ;;  %v395_v32 = vpop.f32.mrf.mxu1 }
  0xb1   : > { %v337_v21 = vadd.f32 %v336_v20, %v287_v19  ;;  %v339_v22 = vpop.f32.mrf.mxu2  ;;  %v396_v34 = vadd.f32 %v395_v32, %v287_v19  ;;  %v398_v35 = vpop.f32.mrf.mxu3 }
  0xb2   : > { %v340_v24 = vadd.f32 %v339_v22, %v292_v18  ;;  %v399_v37 = vadd.f32 %v398_v35, %v292_v18 }
  0xb3   : > { %v346_v25 = vmax.f32 %v337_v21, 0.0  ;;  %v405_v36 = vmax.f32 %v396_v34, 0.0 }
  0xb4   : > { %v347_v26 = vmax.f32 %v340_v24, 0.0  ;;  %v406_v38 = vmax.f32 %v399_v37, 0.0 }
  0xb5   : > { %355 = vadd.xlane.f32.xlu2 %v346_v25 }
  0xb6   : > { %357 = vadd.xlane.f32.xlu0 %v347_v26 }
  0xb9   : > { %v342_v29 = vpop.f32.mrf.mxu2  ;;  %v401_v39 = vpop.f32.mrf.mxu3 }
  0xba   : > { %v343_v30 = vadd.f32 %v342_v29, %v297_v28  ;;  %v402_v40 = vadd.f32 %v401_v39, %v297_v28 }
  0xbc   : > { %v348_v33 = vmax.f32 %v343_v30, 0.0  ;;  %v407_v41 = vmax.f32 %v402_v40, 0.0 }
  0xbd   : > { %413 = vadd.xlane.f32.xlu2 %v404_v31 }
  0xbe   : > { %359 = vadd.xlane.f32.xlu1 %v348_v33 }
  0xc5   : > { %415 = vadd.xlane.f32.xlu2 %v405_v36 }
  0xcd   : > { %417 = vadd.xlane.f32.xlu2 %v406_v38 }
  0xd5   : > { %419 = vadd.xlane.f32.xlu2 %v407_v41 }
 0x120   : > { %v354_v43 = vpop.xlane.xlu2 %353 }
 0x121   : > { %v361_v44 = vadd.f32 %v354_v43, %v349_v42 }
 0x123   : > { %366 = vst.msk [vmem:[#allocation2] sm:$0xff] %vm365_vm3, %v361_v44 }
 0x128   : > { %v356_v47 = vpop.xlane.xlu2 %355 }
 0x129   : > { %v362_v48 = vadd.f32 %v356_v47, %v350_v45  ;;  %v358_v49 = vpop.xlane.xlu0 %357 }
 0x12a   : > { %v363_v50 = vadd.f32 %v358_v49, %v351_v46 }
 0x12b   : > { %367 = vst.msk [vmem:[#allocation2 + $0x8] sm:$0xff] %vm365_vm3, %v362_v48 }
 0x12c   : > { %368 = vst.msk [vmem:[#allocation2 + $0x10] sm:$0xff] %vm365_vm3, %v363_v50 }
 0x130   : > { %v414_v53 = vpop.xlane.xlu2 %413 }
 0x131   : > { %v421_v54 = vadd.f32 %v414_v53, %v409_v51  ;;  %v360_v55 = vpop.xlane.xlu1 %359 }
 0x132   : > { %v364_v56 = vadd.f32 %v360_v55, %v352_v52 }
 0x133   : > { %425 = vst.msk [vmem:[#allocation2 + $0x20] sm:$0xff] %vm365_vm3, %v421_v54 }
 0x134   : > { %369 = vst.msk [vmem:[#allocation2 + $0x18] sm:$0xff] %vm365_vm3, %v364_v56 }
 0x138   : > { %v416_v58 = vpop.xlane.xlu2 %415 }
 0x139   : > { %v422_v59 = vadd.f32 %v416_v58, %v410_v57 }
 0x13b   : > { %426 = vst.msk [vmem:[#allocation2 + $0x28] sm:$0xff] %vm365_vm3, %v422_v59 }
 0x140   : > { %v418_v61 = vpop.xlane.xlu2 %417 }
 0x141   : > { %v423_v62 = vadd.f32 %v418_v61, %v411_v60 }
 0x143   : > { %427 = vst.msk [vmem:[#allocation2 + $0x30] sm:$0xff] %vm365_vm3, %v423_v62 }
 0x147   : > { %432 = sbr.rel (%p547_p9) target bundleno = 590 (0x24e), region = 89 }
 0x148   : > { %v420_v0 = vpop.xlane.xlu2 %419 }
 0x149   : > { %v424_v1 = vadd.f32 %v420_v0, %v412_v63 }
 0x14b   : > { %428 = vst.msk [vmem:[#allocation2 + $0x38] sm:$0xff] %vm365_vm3, %v424_v1 }
 0x14c   : > { %v466_v3 = vld [vmem:[#allocation2 + $0x30] sm:$0xff]  ;;  %v438_v4 = vld [vmem:[#allocation2 + $0x18] sm:$0xff]  ;;  %v465_v5 = vld [vmem:[#allocation2 + $0x28] sm:$0xff]  ;;  %vm439_vm4 = vcmask 261120   ;;  %vm492_vm5 = vcmask 15368  }
 0x14d   : > { %455 = vmatpush.msra.mxu0 %v438_v4  ;;  %v437_v6 = vld [vmem:[#allocation2 + $0x10] sm:$0xff]  ;;  %v436_v7 = vld [vmem:[#allocation2 + $0x8] sm:$0xff]  ;;  %v464_v8 = vld [vmem:[#allocation2 + $0x20] sm:$0xff] }
 0x14e   : > { %v433_v9 = vld [vmem:[%s747_s3] sm:$0xff] }
 0x14f   : > { %456 = vmatpush.msra.mxu0 %v437_v6  ;;  %v435_v10 = vld [vmem:[#allocation2] sm:$0xff] }
 0x150   : > { %v434_v11 = vld [vmem:[%s748_s4] sm:$0xff] }
 0x151   : > { %457 = vmatpush.msra.mxu0 %v436_v7 }
 0x152   : > { %v467_v2 = vld [vmem:[#allocation2 + $0x38] sm:$0xff] }
 0x153   : > { %480 = vmatpush.msra.mxu1 %v467_v2  ;;  %458 = vmatpush.msra.mxu0 %v435_v10 }
 0x154   : > { %548 = vmatmul.msk.f32.vlgmr.msra.gmra.mxu0 %vm439_vm4, %v433_v9 }
 0x155   : > { %481 = vmatpush.msra.mxu1 %v466_v3 }
 0x157   : > { %482 = vmatpush.msra.mxu1 %v465_v5 }
 0x159   : > { %483 = vmatpush.msra.mxu1 %v464_v8 }
 0x15a   : > { %549 = vmatmul.msk.f32.vlgmr.msra.gmra.mxu1 %vm439_vm4, %v433_v9 }
 0x1d1   : > { %v460_v14 = vpop.f32.mrf.mxu0 }
 0x1d2   : > { %v461_v15 = vadd.f32 %v460_v14, %v434_v11 }
 0x1d4   : > { %463 = vst.msk [vmem:[%s749_s5] sm:$0xff] %vm365_vm3, %v461_v15 }
 0x1d7   : > { %v485_v12 = vpop.f32.mrf.mxu1 }
 0x1d8   : > { %v486_v13 = vadd.f32 %v485_v12, %v434_v11 }
 0x1da   : > { %489 = vrot.lane.b32.xlu0 %v486_v13, %s609_s9 }
 0x24c   : > { %v490_v16 = vpop.permute.xlu0 %489 }
 0x24d   : > { %493 = vst.msk [vmem:[%s749_s5] sm:$0xff] %vm492_vm5, %v490_v16 }
 0x24e PF: > { %p12_p10 = scmp.ge.s32.totalorder %s657_s22, 4   ;;  %s750_s18 = smov %s601_s19 }
 0x24f   : > { %s751_s19 = smov %s666_s25  ;;  %s752_s20 = smov %s657_s22 }
 0x250   :  { %14 = sbr.rel (!%p12_p10) target bundleno = 2 (0x2), region = 122 }

</bundles_post_ra>
